<compile_context>
chip_gen: v7x
topology: tpu7x:2x2x1
jax: 0.10.0
libtpu: 0.0.40
codegen_flags: <defaults>
</compile_context>

<pallas_src>
import functools
import math

import jax
import jax.numpy as jnp
from jax.experimental import pallas as pl
from jax.experimental.pallas import tpu as pltpu


# ---------------------------------------------------------------------------
# tiling helpers
# ---------------------------------------------------------------------------
def _round_up(n, m):
    return ((n + m - 1) // m) * m


def _row_tiling(n):
    """Padded row count and (large) row tile; grid-step overhead amortized."""
    if n <= 2048:
        n_pad = _round_up(n, 256)
        return n_pad, n_pad            # single row tile
    n_pad = _round_up(n, 2048)
    return n_pad, 2048


def _agg_row_tile(n_pad):
    """Row tile for A_hat @ Z (the A tile is (tm, n_pad) wide): keep the
    double-buffered A tile comfortably inside VMEM on all generations."""
    budget = 8 << 20
    for t in (2048, 1024, 512, 256):
        if n_pad % t == 0 and 2 * 4 * t * n_pad <= budget:
            return t
    return 256


def _pad_rows(x, n_pad):
    n = x.shape[0]
    if n == n_pad:
        return x
    pad = [(0, n_pad - n)] + [(0, 0)] * (x.ndim - 1)
    return jnp.pad(x, pad)


def _pack_factor(f_in, f_out):
    """Row-folding factor k such that k*f_in and k*f_out are multiples of 128
    (full-lane loads/stores). k==1 means "don't pack"."""
    k1 = 128 // math.gcd(128, f_in)
    k2 = 128 // math.gcd(128, f_out)
    k = k1 * k2 // math.gcd(k1, k2)
    if k == 1:
        return 1
    if k > 8 or (k * k * f_in * f_out * 4) > (2 << 20):
        return 1                        # expanded block-diag weight would be silly
    return k


# ---------------------------------------------------------------------------
# kernels
# ---------------------------------------------------------------------------
def _linear_kernel(*refs, thr, inv_keep, has_bits, has_bias, relu):
    """y = [relu]([dropout](x) @ W [+ b]) -- dropout mask from uint32 bits."""
    i = 0
    bits_ref = refs[i] if has_bits else None
    i += int(has_bits)
    x_ref = refs[i]
    w_ref = refs[i + 1]
    i += 2
    b_ref = refs[i] if has_bias else None
    i += int(has_bias)
    o_ref = refs[i]

    x = x_ref[...]
    if has_bits:
        keep = bits_ref[...] >= jnp.uint32(thr)      # integer-domain compare
        x = jnp.where(keep, x * inv_keep, jnp.zeros_like(x))
    y = jnp.dot(x, w_ref[...], preferred_element_type=jnp.float32)
    if has_bias:
        y = y + b_ref[...]
    if relu:
        y = jnp.maximum(y, 0.0)
    o_ref[...] = y.astype(o_ref.dtype)


def _aggregate_kernel(a_ref, z_ref, b_ref, o_ref, *, relu):
    """out = [relu](A_rows @ Z + b)."""
    y = jnp.dot(a_ref[...], z_ref[...], preferred_element_type=jnp.float32)
    y = y + b_ref[...]
    if relu:
        y = jnp.maximum(y, 0.0)
    o_ref[...] = y.astype(o_ref.dtype)


def _disc_kernel(h_ref, w1_ref, b1_ref, w2_ref, b2_ref, w3_ref, b3_ref, o_ref):
    """DomainDiscriminator: Linear->ReLU->Linear->ReLU->Linear, fully fused."""
    h = jnp.dot(h_ref[...], w1_ref[...], preferred_element_type=jnp.float32)
    h = jnp.maximum(h + b1_ref[...], 0.0)
    h = jnp.dot(h, w2_ref[...], preferred_element_type=jnp.float32)
    h = jnp.maximum(h + b2_ref[...], 0.0)
    o = jnp.dot(h, w3_ref[...], preferred_element_type=jnp.float32) + b3_ref[...]
    o_ref[...] = o.astype(o_ref.dtype)


# ---------------------------------------------------------------------------
# pallas_call wrappers
# ---------------------------------------------------------------------------
def _fused_linear(x, w, b=None, *, relu=False, dropout_bits=None, dropout_p=0.0):
    """y = [relu]([dropout_p](x) @ w [+ b]); rows padded, big row tiles,
    lane-dense packing via block-diagonal weight expansion when possible."""
    n, f_in = x.shape
    f_out = w.shape[1]
    n_pad, tm = _row_tiling(n)
    has_bits = (dropout_bits is not None) and (dropout_p > 0.0)
    has_bias = b is not None

    x_p = _pad_rows(x, n_pad)
    bits_p = _pad_rows(dropout_bits, n_pad) if has_bits else None

    # Lane-dense packing: fold k rows into one so every last dim is a multiple
    # of 128 -> unmasked vld/vst.  Weight becomes kron(I_k, W) so the matmul
    # directly produces the packed output (no in-kernel relayout, exact math).
    k = _pack_factor(f_in, f_out)
    if k > 1:
        x_p = x_p.reshape(n_pad // k, k * f_in)
        if has_bits:
            bits_p = bits_p.reshape(n_pad // k, k * f_in)
        w = jnp.kron(jnp.eye(k, dtype=w.dtype), w)
        if has_bias:
            b = jnp.tile(b, k)
    rows, cols_in = x_p.shape
    cols_out = k * f_out
    tr = tm // k

    args, in_specs = [], []
    if has_bits:
        args.append(bits_p)
        in_specs.append(pl.BlockSpec((tr, cols_in), lambda i: (i, 0)))
    args.append(x_p)
    in_specs.append(pl.BlockSpec((tr, cols_in), lambda i: (i, 0)))
    args.append(w)
    in_specs.append(pl.BlockSpec((cols_in, cols_out), lambda i: (0, 0)))
    if has_bias:
        args.append(b.reshape(1, cols_out))
        in_specs.append(pl.BlockSpec((1, cols_out), lambda i: (0, 0)))

    thr = min(int(round(dropout_p * (2.0 ** 32))), 2 ** 32 - 1) if has_bits else 0
    inv_keep = float(1.0 / (1.0 - dropout_p)) if has_bits else 1.0
    kernel = functools.partial(_linear_kernel, thr=thr, inv_keep=inv_keep,
                               has_bits=has_bits, has_bias=has_bias, relu=relu)
    cost = pl.CostEstimate(
        flops=2 * rows * cols_in * cols_out,
        transcendentals=0,
        bytes_accessed=4 * (rows * cols_in * (2 if has_bits else 1)
                            + cols_in * cols_out + rows * cols_out))
    out = pl.pallas_call(
        kernel,
        out_shape=jax.ShapeDtypeStruct((rows, cols_out), x.dtype),
        grid=(rows // tr,),
        in_specs=in_specs,
        out_specs=pl.BlockSpec((tr, cols_out), lambda i: (i, 0)),
        compiler_params=pltpu.CompilerParams(dimension_semantics=("parallel",)),
        cost_estimate=cost,
    )(*args)
    return out.reshape(n_pad, f_out)[:n]


def _gcn_aggregate(a_hat_pad, z, b, *, relu):
    """out = [relu](A_hat @ z + b); A_hat already zero-padded to (n_pad, n_pad)."""
    n_pad = a_hat_pad.shape[0]
    n, f = z.shape
    z_p = _pad_rows(z, n_pad)
    tm = _agg_row_tile(n_pad)

    kernel = functools.partial(_aggregate_kernel, relu=relu)
    cost = pl.CostEstimate(
        flops=2 * n_pad * n_pad * f,
        transcendentals=0,
        bytes_accessed=4 * (n_pad * n_pad + 2 * n_pad * f))
    out = pl.pallas_call(
        kernel,
        out_shape=jax.ShapeDtypeStruct((n_pad, f), z.dtype),
        grid=(n_pad // tm,),
        in_specs=[
            pl.BlockSpec((tm, n_pad), lambda i: (i, 0)),
            pl.BlockSpec((n_pad, f), lambda i: (0, 0)),
            pl.BlockSpec((1, f), lambda i: (0, 0)),
        ],
        out_specs=pl.BlockSpec((tm, f), lambda i: (i, 0)),
        compiler_params=pltpu.CompilerParams(dimension_semantics=("parallel",)),
        cost_estimate=cost,
    )(a_hat_pad, z_p, b.reshape(1, f))
    return out[:n]


def _discriminator_forward(h, p, *, rows_per_group):
    """Runs G stacked DomainDiscriminators; group g sees rows
    [g*rows_per_group, (g+1)*rows_per_group) of h.  G==1 is the student."""
    w1, b1 = p["w1"], p["b1"]
    w2, b2 = p["w2"], p["b2"]
    w3, b3 = p["w3"], p["b3"]
    g, f_in, d1 = w1.shape
    d2, d3 = w2.shape[2], w3.shape[2]
    assert h.shape == (g * rows_per_group, f_in)

    if g == 1:
        rows_pad, tr = _row_tiling(rows_per_group)
        h = _pad_rows(h, rows_pad)
    else:
        assert rows_per_group % 8 == 0, "teacher split must be sublane-aligned"
        rows_pad, tr = rows_per_group, rows_per_group
    row_blocks = rows_pad // tr

    def rows_map(gi, ri):
        return (gi * row_blocks + ri, 0)

    def w_map(gi, ri):
        return (gi, 0, 0)

    cost = pl.CostEstimate(
        flops=2 * g * rows_pad * (f_in * d1 + d1 * d2 + d2 * d3),
        transcendentals=0,
        bytes_accessed=4 * (g * rows_pad * (f_in + d3)
                            + g * (f_in * d1 + d1 * d2 + d2 * d3 + d1 + d2 + d3)))
    out = pl.pallas_call(
        _disc_kernel,
        out_shape=jax.ShapeDtypeStruct((g * rows_pad, d3), h.dtype),
        grid=(g, row_blocks),
        in_specs=[
            pl.BlockSpec((tr, f_in), rows_map),
            pl.BlockSpec((None, f_in, d1), w_map),
            pl.BlockSpec((None, 1, d1), w_map),
            pl.BlockSpec((None, d1, d2), w_map),
            pl.BlockSpec((None, 1, d2), w_map),
            pl.BlockSpec((None, d2, d3), w_map),
            pl.BlockSpec((None, 1, d3), w_map),
        ],
        out_specs=pl.BlockSpec((tr, d3), rows_map),
        compiler_params=pltpu.CompilerParams(
            dimension_semantics=("parallel", "parallel")),
        cost_estimate=cost,
    )(h, w1, b1, w2, b2, w3, b3)
    return out[: g * rows_per_group]


# ---------------------------------------------------------------------------
# graph normalization (wrapper-side)
# ---------------------------------------------------------------------------
def gcn_norm_dense(edge_index, num_nodes, num_nodes_pad):
    """Dense GCN normalization A_hat = D^-1/2 (A + I) D^-1/2, zero padded.

    TODO(synk): the data-dependent scatter that builds/normalizes the sparse
    adjacency has no clean Pallas equivalent; it stays in plain JAX.
    """
    src = edge_index[0].astype(jnp.int32)
    dst = edge_index[1].astype(jnp.int32)
    loop = jnp.arange(num_nodes, dtype=jnp.int32)          # add self loops
    src = jnp.concatenate([src, loop])
    dst = jnp.concatenate([dst, loop])
    w = jnp.ones(src.shape, jnp.float32)
    deg = jnp.zeros((num_nodes,), jnp.float32).at[dst].add(w)
    dinv = jax.lax.rsqrt(jnp.maximum(deg, 1e-12))
    vals = dinv[dst] * w * dinv[src]
    a = jnp.zeros((num_nodes_pad, num_nodes_pad), jnp.float32)
    return a.at[dst, src].add(vals)


# ---------------------------------------------------------------------------
# parameters
# ---------------------------------------------------------------------------
def init_fgnn_params(key, n_input, n_hidden, n_emb, num_class,
                     n_teachers=8, disc_hidden=128):
    assert n_hidden[-1] == n_emb, "GCN output dim must equal n_emb"
    dims = [n_input] + list(n_hidden)
    ks = jax.random.split(key, len(dims) - 1 + 3)

    def glorot(k, fi, fo):
        lim = (6.0 / (fi + fo)) ** 0.5
        return jax.random.uniform(k, (fi, fo), jnp.float32, -lim, lim)

    def trunc(k, shape, std):
        return jax.random.truncated_normal(k, -2.0, 2.0, shape, jnp.float32) * std

    gcn_ws = [glorot(ks[i], dims[i], dims[i + 1]) for i in range(len(dims) - 1)]
    gcn_bs = [jnp.zeros((dims[i + 1],), jnp.float32) for i in range(len(dims) - 1)]
    std_emb = 1.0 / (n_emb / 2.0) ** 0.5

    def disc_params(k, g):
        k1, k2, k3 = jax.random.split(k, 3)
        return {
            "w1": trunc(k1, (g, n_emb, disc_hidden), std_emb),
            "b1": jnp.full((g, 1, disc_hidden), 0.1, jnp.float32),
            "w2": trunc(k2, (g, disc_hidden, disc_hidden), 0.125),
            "b2": jnp.full((g, 1, disc_hidden), 0.1, jnp.float32),
            "w3": trunc(k3, (g, disc_hidden, 2), 0.125),
            "b3": jnp.full((g, 1, 2), 0.1, jnp.float32),
        }

    return {
        "gcn_ws": gcn_ws,
        "gcn_bs": gcn_bs,
        "cls_w": trunc(ks[-3], (n_emb, num_class), std_emb),
        "cls_b": jnp.full((num_class,), 0.1, jnp.float32),
        "teachers": disc_params(ks[-2], n_teachers),
        "student": disc_params(ks[-1], 1),
    }


# ---------------------------------------------------------------------------
# FGNN_model.forward
# ---------------------------------------------------------------------------
def fgnn_forward(params, x, edge_index, edge_weight=None, *,
                 dropout_p=0.5, batch_size=128, training=True, dropout_key=None):
    """Returns (emb, pred_logit, d_logits, stu_logits).

    NOTE: mirroring the reference module, `edge_weight` is accepted but unused
    (FGNN_model.forward passes it into GCN.forward's `cached_name` slot, so the
    'gcn'-type GCNConv recomputes its own normalization from edge_index alone).
    """
    del edge_weight
    n = x.shape[0]
    n_pad, _ = _row_tiling(n)
    a_hat = gcn_norm_dense(edge_index, n, n_pad)

    use_dropout = training and dropout_p > 0.0
    if use_dropout:
        assert 0.0 < dropout_p < 1.0, "dropout_p must be in [0, 1)"
        if dropout_key is None:
            dropout_key = jax.random.PRNGKey(0)

    gcn_ws, gcn_bs = params["gcn_ws"], params["gcn_bs"]
    h = x
    for i, (w, b) in enumerate(zip(gcn_ws, gcn_bs)):
        bits = None
        if use_dropout:   # dropout feeds every conv input (input + post-relu)
            dropout_key, sub = jax.random.split(dropout_key)
            bits = jax.random.bits(sub, h.shape, jnp.uint32)
        is_last = i == len(gcn_ws) - 1
        z = _fused_linear(h, w, None, relu=False, dropout_bits=bits,
                          dropout_p=dropout_p if use_dropout else 0.0)
        h = _gcn_aggregate(a_hat, z, b, relu=not is_last)
    emb = h

    pred_logit = _fused_linear(emb, params["cls_w"], params["cls_b"], relu=False)

    h_grl = emb                       # GRL is identity in the forward pass

    n_teachers = params["teachers"]["w1"].shape[0]
    assert batch_size % n_teachers == 0 and batch_size <= n
    d_logits = _discriminator_forward(
        jax.lax.stop_gradient(h_grl)[:batch_size], params["teachers"],
        rows_per_group=batch_size // n_teachers)

    stu_logits = _discriminator_forward(h_grl, params["student"],
                                        rows_per_group=n)
    return emb, pred_logit, d_logits, stu_logits


# ---------------------------------------------------------------------------
# pure-JAX reference (dropout disabled) for the correctness check
# ---------------------------------------------------------------------------
def _reference_forward(params, x, a_hat_n, batch_size):
    h = x
    ws, bs = params["gcn_ws"], params["gcn_bs"]
    for i, (w, b) in enumerate(zip(ws, bs)):
        h = a_hat_n @ (h @ w) + b
        if i != len(ws) - 1:
            h = jnp.maximum(h, 0.0)
    emb = h
    pred = emb @ params["cls_w"] + params["cls_b"]

    def disc(hh, p, g):
        a = jnp.maximum(hh @ p["w1"][g] + p["b1"][g], 0.0)
        a = jnp.maximum(a @ p["w2"][g] + p["b2"][g], 0.0)
        return a @ p["w3"][g] + p["b3"][g]

    n_teachers = params["teachers"]["w1"].shape[0]
    split = batch_size // n_teachers
    d = jnp.concatenate(
        [disc(emb[t * split:(t + 1) * split], params["teachers"], t)
         for t in range(n_teachers)], axis=0)
    stu = disc(emb, params["student"], 0)
    return emb, pred, d, stu


if __name__ == "__main__":
    # Small deterministic graph consistent with FGNN_model's forward:
    #   x: (num_nodes, n_input), edge_index: (2, E), edge_weight: (E,)
    num_nodes, n_input = 256, 32
    n_hidden = (64, 32)                 # GCN: 32 -> 64 -> 32 (= n_emb)
    n_emb, num_class = 32, 7
    dropout_p, batch_size = 0.5, 128    # batch_size / 8 teachers = 16 rows each
    num_edges = 1024

    root = jax.random.PRNGKey(0)
    kx, ke1, ke2, kp, kd = jax.random.split(root, 5)
    x = jax.random.normal(kx, (num_nodes, n_input), jnp.float32)
    edge_index = jnp.stack([
        jax.random.randint(ke1, (num_edges,), 0, num_nodes),
        jax.random.randint(ke2, (num_edges,), 0, num_nodes)])
    edge_weight = jnp.ones((num_edges,), jnp.float32)   # unused (module quirk)

    params = init_fgnn_params(kp, n_input, n_hidden, n_emb, num_class)

    # Training-mode forward (dropout active, as nn.Module defaults to train()).
    emb, pred_logit, d_logits, stu_logits = fgnn_forward(
        params, x, edge_index, edge_weight, dropout_p=dropout_p,
        batch_size=batch_size, training=True, dropout_key=kd)
    jax.block_until_ready((emb, pred_logit, d_logits, stu_logits))
    assert emb.shape == (num_nodes, n_emb)
    assert pred_logit.shape == (num_nodes, num_class)
    assert d_logits.shape == (batch_size, 2)
    assert stu_logits.shape == (num_nodes, 2)

    # Eval-mode forward (dropout off) checked against the pure-JAX reference.
    outs = jax.block_until_ready(fgnn_forward(
        params, x, edge_index, edge_weight, dropout_p=dropout_p,
        batch_size=batch_size, training=False))
    a_hat_n = gcn_norm_dense(edge_index, num_nodes, num_nodes)
    refs = _reference_forward(params, x, a_hat_n, batch_size)
    for got, ref in zip(outs, refs):
        err = float(jnp.max(jnp.abs(got - ref)))
        assert jnp.allclose(got, ref, atol=2e-2, rtol=2e-2), err

    print("KERNEL_OK")
</pallas_src>

<mosaic_0001>
module attributes {stable_mosaic.version = 11 : i64} {
  func.func @_linear_kernel(%arg0: i32, %arg1: memref<64x128xi32, #tpu.memory_space<vmem>>, %arg2: memref<64x128xf32, #tpu.memory_space<vmem>>, %arg3: memref<128x256xf32, #tpu.memory_space<vmem>>, %arg4: memref<64x256xf32, #tpu.memory_space<vmem>>) attributes {dimension_semantics = [#tpu.dimension_semantics<parallel>], iteration_bounds = array<i64: 1>, scalar_prefetch = 0 : i64, scratch_operands = 0 : i64, tpu.core_type = #tpu.core_type<tc>, window_params = [{transform_indices = @transform_0, window_bounds = array<i64: 64, 128>}, {transform_indices = @transform_1, window_bounds = array<i64: 64, 128>}, {pipeline_mode = #tpu.pipeline_mode<synchronous>, transform_indices = @transform_2, window_bounds = array<i64: 128, 256>}, {transform_indices = @transform_3, window_bounds = array<i64: 64, 256>}]} {
    %c0 = arith.constant 0 : index
    %c0_0 = arith.constant 0 : index
    %0 = vector.load %arg2[%c0, %c0_0] : memref<64x128xf32, #tpu.memory_space<vmem>>, vector<64x128xf32>
    %c0_1 = arith.constant 0 : index
    %c0_2 = arith.constant 0 : index
    %1 = vector.load %arg1[%c0_1, %c0_2] : memref<64x128xi32, #tpu.memory_space<vmem>>, vector<64x128xi32>
    %c-2147483648_i32 = arith.constant -2147483648 : i32
    %2 = vector.broadcast %c-2147483648_i32 : i32 to vector<64x128xi32>
    %3 = arith.cmpi uge, %1, %2 : vector<64x128xi32>
    %cst = arith.constant 2.000000e+00 : f32
    %4 = vector.broadcast %cst : f32 to vector<64x128xf32>
    %5 = arith.mulf %0, %4 : vector<64x128xf32>
    %cst_3 = arith.constant 0.000000e+00 : f32
    %6 = vector.broadcast %cst_3 : f32 to vector<64x128xf32>
    %7 = arith.select %3, %5, %6 : vector<64x128xi1>, vector<64x128xf32>
    %c0_4 = arith.constant 0 : index
    %c0_5 = arith.constant 0 : index
    %8 = vector.load %arg3[%c0_4, %c0_5] : memref<128x256xf32, #tpu.memory_space<vmem>>, vector<128x256xf32>
    %cst_6 = arith.constant dense<0.000000e+00> : vector<64x256xf32>
    %9 = tpu.matmul %7, %8, %cst_6 {dimension_numbers = #tpu.dot_dimension_numbers<[1], [0], [0], [1], [0, 0, 1, 1], [], []>} : vector<64x128xf32>, vector<128x256xf32>, vector<64x256xf32> -> vector<64x256xf32>
    %c0_7 = arith.constant 0 : index
    %c0_8 = arith.constant 0 : index
    %10 = vector.load %arg4[%c0_7, %c0_8] : memref<64x256xf32, #tpu.memory_space<vmem>>, vector<64x256xf32>
    tpu.vector_store %arg4[%c0_7, %c0_8], %9 {strides = array<i32>} : memref<64x256xf32, #tpu.memory_space<vmem>>, vector<64x256xf32>,
    return
  }
  func.func @transform_0(%arg0: i32) -> (i32, i32) {
    %c0_i32 = arith.constant 0 : i32
    %c0_i32_0 = arith.constant 0 : i32
    return %arg0, %c0_i32 : i32, i32
  }
  func.func @transform_1(%arg0: i32) -> (i32, i32) {
    %c0_i32 = arith.constant 0 : i32
    %c0_i32_0 = arith.constant 0 : i32
    return %arg0, %c0_i32 : i32, i32
  }
  func.func @transform_2(%arg0: i32) -> (i32, i32) {
    %c0_i32 = arith.constant 0 : i32
    %c0_i32_0 = arith.constant 0 : i32
    %c0_i32_1 = arith.constant 0 : i32
    return %c0_i32, %c0_i32_0 : i32, i32
  }
  func.func @transform_3(%arg0: i32) -> (i32, i32) {
    %c0_i32 = arith.constant 0 : i32
    %c0_i32_0 = arith.constant 0 : i32
    return %arg0, %c0_i32 : i32, i32
  }
}

</mosaic_0001>

<bundles_post_ra>
// kernel: tpu_custom_call.1
= control target key start
LH: loop header
LB: loop body
LE: loop exit
PB: predicated region body
PF: predicated region fallthrough
CT: control target
= control target key end

     0   :  { %8 = vsyncpa [#allocation3], 0  ;;  %s532_s0 = inlined_call_operand.hbm [shape: u32[64,128], index: 0, kind: input, shape index: {}]   ;;  %s533_s1 = inlined_call_operand.hbm [shape: f32[64,128], index: 1, kind: input, shape index: {}]   ;;  %s534_s2 = inlined_call_operand.hbm [shape: f32[128,256], index: 2, kind: input, shape index: {}]   ;;  %s535_s3 = inlined_call_operand.hbm [shape: f32[64,256], index: 3, kind: output, shape index: {}]  }
   0x1   :  { %9 = vsyncpa [#allocation6], 0 }
   0x2   :  { %10 = vsyncpa [#allocation4], 0  ;;  %s434_s12 = smov [#allocation5]   ;;  %s435_s14 = smov [#allocation2]  }
   0x3   :  { %s28_s13 = sshll.u32 %s434_s12, 4  ;;  %s16_s15 = sshll.u32 %s435_s14, 4  ;;  %s29_s13 = int_to_ptr.vmem [resolvable:$true] %s28_s13  ;;  %s463_s15 = int_to_ptr.vmem [resolvable:$true] %s16_s15 }
   0x4   :  { %s340_s18 = scalar_lea.hbm %s533_s1, 1024 }
   0x5   :  { %p341_p0 = scmp.ne.s32.totalorder %s533_s1, %s340_s18  ;;  %p344_p1 = scmp.lt.u32.totalorder %s340_s18, %s533_s1 }
   0x7   :  { %p346_p2 = pnand %p344_p1, %p341_p0 }
   0x9   :  { %349 = shalt.err (!%p346_p2)
}
   0xa   :  { %s350_s23 = scalar_lea.vmem %s29_s13, 1024  ;;  %p355_p4 = scmp.lt.s32.totalorder %s29_s13, %s29_s13 }
   0xb   :  { %p351_p3 = scmp.ne.s32.totalorder %s29_s13, %s350_s23  ;;  %p356_p5 = scmp.lt.s32.totalorder %s350_s23, %s350_s23 }
   0xd   :  { %p357_p6 = por %p356_p5, %p355_p4 }
   0xf   :  { %p358_p7 = pnand %p357_p6, %p351_p3 }
  0x11   :  { %361 = shalt.err (!%p358_p7)
}
  0x12   :  { %s436_s24 = smov 128   ;;  %s437_s25 = smov 8  }
  0x13   :  { %34 = dma.hbm_to_vmem [thread:$0]  %s533_s1, 1024, %s29_s13, [#allocation6], %s436_s24, %s436_s24, %s437_s25  }
  0x14   :  { %s362_s30 = scalar_lea.hbm %s532_s0, 1024 }
  0x15   :  { %p363_p8 = scmp.ne.s32.totalorder %s532_s0, %s362_s30  ;;  %p366_p9 = scmp.lt.u32.totalorder %s362_s30, %s532_s0 }
  0x17   :  { %p368_p10 = pnand %p366_p9, %p363_p8 }
  0x19   :  { %371 = shalt.err (!%p368_p10)
}
  0x1a   :  { %s372_s8 = scalar_lea.vmem %s463_s15, 1024  ;;  %p377_p12 = scmp.lt.s32.totalorder %s463_s15, %s463_s15 }
  0x1b   :  { %p373_p11 = scmp.ne.s32.totalorder %s463_s15, %s372_s8  ;;  %p378_p13 = scmp.lt.s32.totalorder %s372_s8, %s372_s8 }
  0x1d   :  { %p379_p0 = por %p378_p13, %p377_p12 }
  0x1f   :  { %p380_p1 = pnand %p379_p0, %p373_p11 }
  0x21   :  { %383 = shalt.err (!%p380_p1)
}
  0x22   :  { %22 = dma.hbm_to_vmem [thread:$0]  %s532_s0, 1024, %s463_s15, [#allocation3], %s436_s24, %s436_s24, %s437_s25  }
  0x23   :  { %s438_s10 = smov [#allocation7]   ;;  %s384_s14 = scalar_lea.hbm %s534_s2, 4096 }
  0x24   :  { %s40_s11 = sshll.u32 %s438_s10, 4  ;;  %p385_p2 = scmp.ne.s32.totalorder %s534_s2, %s384_s14  ;;  %s41_s11 = int_to_ptr.vmem [resolvable:$true] %s40_s11 }
  0x25   :  { %p388_p3 = scmp.lt.u32.totalorder %s384_s14, %s534_s2 }
  0x27   :  { %p390_p4 = pnand %p388_p3, %p385_p2 }
  0x29   :  { %393 = shalt.err (!%p390_p4)
}
  0x2a   :  { %s394_s20 = scalar_lea.vmem %s41_s11, 4096  ;;  %p399_p6 = scmp.lt.s32.totalorder %s41_s11, %s41_s11 }
  0x2b   :  { %p395_p5 = scmp.ne.s32.totalorder %s41_s11, %s394_s20  ;;  %p400_p7 = scmp.lt.s32.totalorder %s394_s20, %s394_s20 }
  0x2d   :  { %p401_p8 = por %p400_p7, %p399_p6 }
  0x2f   :  { %p402_p9 = pnand %p401_p8, %p395_p5 }
  0x31   :  { %405 = shalt.err (!%p402_p9)
}
  0x32   :  { %s439_s0 = smov 256   ;;  %s440_s15 = smov 16  }
  0x33   :  { %46 = dma.hbm_to_vmem [thread:$0]  %s534_s2, 4096, %s41_s11, [#allocation6], %s439_s0, %s439_s0, %s440_s15  }
  0x34   :  { %428 = dma.done.wait [#allocation3], 1024  }
  0x35   :  { %429 = vsyncadd [#allocation3], 4294966272 }
  0x36   :  { %430 = dma.done.wait [#allocation6], 5120  }
  0x37   :  { %431 = vsyncadd [#allocation6], 4294962176  ;;  %v441_v0 = vmov 0.0   ;;  %v97_v1 = vld [vmem:[#allocation7 + $0x8] sm:$0xff]  ;;  %v99_v2 = vld [vmem:[#allocation7 + $0x18] sm:$0xff]  ;;  %s442_s2 = smov [#allocation8]  }
  0x38   :  { %192 = vmatprep.mubr.f32.mxu0 %v441_v0  ;;  %216 = vmatprep.mubr.f32.mxu1 %v441_v0  ;;  %v96_v3 = vld [vmem:[#allocation7] sm:$0xff]  ;;  %v283_v4 = vpack.c.bf16 %v99_v2, %v97_v1  ;;  %v98_v5 = vld [vmem:[#allocation7 + $0x10] sm:$0xff]  ;;  %v101_v6 = vld [vmem:[#allocation7 + $0x28] sm:$0xff]  ;;  %s262_s23 = sshll.u32 %s442_s2, 4  ;;  %s263_s23 = int_to_ptr.vmem [resolvable:$true] %s262_s23 }
  0x39   :  { %v103_v7 = vld [vmem:[#allocation7 + $0x38] sm:$0xff]  ;;  %v285_v8 = vpack.c.bf16 %v98_v5, %v96_v3  ;;  %v100_v10 = vld [vmem:[#allocation7 + $0x20] sm:$0xff]  ;;  %v102_v11 = vld [vmem:[#allocation7 + $0x30] sm:$0xff]  ;;  %s406_s24 = scalar_lea.vmem %s263_s23, 2048  ;;  %p411_p11 = scmp.lt.s32.totalorder %s263_s23, %s263_s23 }
  0x3a   :  { %v287_v9 = vpack.c.bf16 %v103_v7, %v101_v6  ;;  %v105_v12 = vld [vmem:[#allocation7 + $0x48] sm:$0xff]  ;;  %284 = vmatprep.subr.bf16.mxu0 %v283_v4  ;;  %315 = vmatprep.subr.bf16.mxu1 %v283_v4  ;;  %v107_v13 = vld [vmem:[#allocation7 + $0x58] sm:$0xff]  ;;  %v289_v14 = vpack.c.bf16 %v102_v11, %v100_v10  ;;  %v104_v16 = vld [vmem:[#allocation7 + $0x40] sm:$0xff]  ;;  %p407_p10 = scmp.ne.s32.totalorder %s263_s23, %s406_s24  ;;  %p412_p12 = scmp.lt.s32.totalorder %s406_s24, %s406_s24 }
  0x3b   :  { %286 = vmatpush1.bf16.msra.mxu0 %v285_v8  ;;  %323 = vmatpush1.bf16.msra.mxu1 %v285_v8  ;;  %v291_v15 = vpack.c.bf16 %v107_v13, %v105_v12  ;;  %v106_v17 = vld [vmem:[#allocation7 + $0x50] sm:$0xff]  ;;  %v109_v18 = vld [vmem:[#allocation7 + $0x68] sm:$0xff]  ;;  %v111_v19 = vld [vmem:[#allocation7 + $0x78] sm:$0xff] }
  0x3c   :  { %288 = vmatprep.subr.bf16.mxu0 %v287_v9  ;;  %316 = vmatprep.subr.bf16.mxu1 %v287_v9  ;;  %v293_v20 = vpack.c.bf16 %v106_v17, %v104_v16  ;;  %v295_v21 = vpack.c.bf16 %v111_v19, %v109_v18  ;;  %v108_v22 = vld [vmem:[#allocation7 + $0x60] sm:$0xff]  ;;  %v110_v23 = vld [vmem:[#allocation7 + $0x70] sm:$0xff]  ;;  %v113_v24 = vld [vmem:[#allocation7 + $0x88] sm:$0xff]  ;;  %p413_p13 = por %p412_p12, %p411_p11 }
  0x3d   :  { %v115_v25 = vld [vmem:[#allocation7 + $0x98] sm:$0xff]  ;;  %v297_v26 = vpack.c.bf16 %v110_v23, %v108_v22  ;;  %v112_v28 = vld [vmem:[#allocation7 + $0x80] sm:$0xff]  ;;  %v114_v29 = vld [vmem:[#allocation7 + $0x90] sm:$0xff] }
  0x3e   :  { %v299_v27 = vpack.c.bf16 %v115_v25, %v113_v24  ;;  %v117_v30 = vld [vmem:[#allocation7 + $0xa8] sm:$0xff]  ;;  %v119_v31 = vld [vmem:[#allocation7 + $0xb8] sm:$0xff]  ;;  %v301_v32 = vpack.c.bf16 %v114_v29, %v112_v28  ;;  %v116_v34 = vld [vmem:[#allocation7 + $0xa0] sm:$0xff]  ;;  %p414_p0 = pnand %p413_p13, %p407_p10 }
  0x3f   :  { %290 = vmatpush1.bf16.msra.mxu0 %v289_v14  ;;  %324 = vmatpush1.bf16.msra.mxu1 %v289_v14  ;;  %v303_v33 = vpack.c.bf16 %v119_v31, %v117_v30  ;;  %v118_v35 = vld [vmem:[#allocation7 + $0xb0] sm:$0xff]  ;;  %v121_v36 = vld [vmem:[#allocation7 + $0xc8] sm:$0xff]  ;;  %v123_v37 = vld [vmem:[#allocation7 + $0xd8] sm:$0xff] }
  0x40   :  { %292 = vmatprep.subr.bf16.mxu0 %v291_v15  ;;  %317 = vmatprep.subr.bf16.mxu1 %v291_v15  ;;  %v305_v38 = vpack.c.bf16 %v118_v35, %v116_v34  ;;  %v307_v39 = vpack.c.bf16 %v123_v37, %v121_v36  ;;  %v120_v40 = vld [vmem:[#allocation7 + $0xc0] sm:$0xff]  ;;  %v122_v41 = vld [vmem:[#allocation7 + $0xd0] sm:$0xff]  ;;  %v125_v42 = vld [vmem:[#allocation7 + $0xe8] sm:$0xff] }
  0x41   :  { %v127_v43 = vld [vmem:[#allocation7 + $0xf8] sm:$0xff]  ;;  %v309_v44 = vpack.c.bf16 %v122_v41, %v120_v40  ;;  %v124_v46 = vld [vmem:[#allocation7 + $0xe0] sm:$0xff]  ;;  %v126_v47 = vld [vmem:[#allocation7 + $0xf0] sm:$0xff] }
  0x42   :  { %v311_v45 = vpack.c.bf16 %v127_v43, %v125_v42  ;;  %v313_v48 = vpack.c.bf16 %v126_v47, %v124_v46  ;;  %v56_v49 = vld [vmem:[#allocation5] sm:$0xff]  ;;  %v57_v55 = vld [vmem:[#allocation5 + $0x8] sm:$0xff]  ;;  %v58_v61 = vld [vmem:[#allocation5 + $0x10] sm:$0xff] }
  0x43   :  { %294 = vmatpush1.bf16.msra.mxu0 %v293_v20  ;;  %325 = vmatpush1.bf16.msra.mxu1 %v293_v20  ;;  %v60_v50 = vld [vmem:[#allocation5 + $0x20] sm:$0xff]  ;;  %v80_v53 = vmul.f32 2.0, %v56_v49  ;;  %v61_v56 = vld [vmem:[#allocation5 + $0x28] sm:$0xff]  ;;  %v81_v59 = vmul.f32 2.0, %v57_v55  ;;  %v62_v62 = vld [vmem:[#allocation5 + $0x30] sm:$0xff]  ;;  %v82_v2 = vmul.f32 2.0, %v58_v61 }
  0x44   :  { %296 = vmatprep.subr.bf16.mxu0 %v295_v21  ;;  %318 = vmatprep.subr.bf16.mxu1 %v295_v21  ;;  %v64_v51 = vld [vmem:[#allocation2] sm:$0xff]  ;;  %v84_v54 = vmul.f32 2.0, %v60_v50  ;;  %v65_v57 = vld [vmem:[#allocation2 + $0x8] sm:$0xff]  ;;  %v85_v60 = vmul.f32 2.0, %v61_v56  ;;  %v66_v63 = vld [vmem:[#allocation2 + $0x10] sm:$0xff]  ;;  %v86_v3 = vmul.f32 2.0, %v62_v62 }
  0x45   :  { %v68_v52 = vld [vmem:[#allocation2 + $0x20] sm:$0xff]  ;;  %vm72_vm0 = vcmp.ge.u32.totalorder %v64_v51, 2147483648  ;;  %v69_v58 = vld [vmem:[#allocation2 + $0x28] sm:$0xff]  ;;  %vm73_vm2 = vcmp.ge.u32.totalorder %v65_v57, 2147483648  ;;  %v70_v1 = vld [vmem:[#allocation2 + $0x30] sm:$0xff]  ;;  %vm74_vm4 = vcmp.ge.u32.totalorder %v66_v63, 2147483648 }
  0x46   :  { %vm76_vm1 = vcmp.ge.u32.totalorder %v68_v52, 2147483648  ;;  %vm77_vm3 = vcmp.ge.u32.totalorder %v69_v58, 2147483648  ;;  %vm78_vm5 = vcmp.ge.u32.totalorder %v70_v1, 2147483648  ;;  %v59_v4 = vld [vmem:[#allocation5 + $0x18] sm:$0xff] }
  0x47   :  { %298 = vmatpush1.bf16.msra.mxu0 %v297_v26  ;;  %326 = vmatpush1.bf16.msra.mxu1 %v297_v26  ;;  %v63_v5 = vld [vmem:[#allocation5 + $0x38] sm:$0xff]  ;;  %v83_v8 = vmul.f32 2.0, %v59_v4 }
  0x48   :  { %300 = vmatprep.subr.bf16.mxu0 %v299_v27  ;;  %319 = vmatprep.subr.bf16.mxu1 %v299_v27  ;;  %v67_v6 = vld [vmem:[#allocation2 + $0x18] sm:$0xff]  ;;  %v87_v9 = vmul.f32 2.0, %v63_v5 }
  0x49   :  { %v71_v7 = vld [vmem:[#allocation2 + $0x38] sm:$0xff]  ;;  %vm75_vm6 = vcmp.ge.u32.totalorder %v67_v6, 2147483648 }
  0x4a   :  { %vm79_vm7 = vcmp.ge.u32.totalorder %v71_v7, 2147483648 }
  0x4b   :  { %302 = vmatpush1.bf16.msra.mxu0 %v301_v32  ;;  %327 = vmatpush1.bf16.msra.mxu1 %v301_v32 }
  0x4c   :  { %304 = vmatprep.subr.bf16.mxu0 %v303_v33  ;;  %320 = vmatprep.subr.bf16.mxu1 %v303_v33 }
  0x4f   :  { %306 = vmatpush1.bf16.msra.mxu0 %v305_v38  ;;  %328 = vmatpush1.bf16.msra.mxu1 %v305_v38 }
  0x50   :  { %308 = vmatprep.subr.bf16.mxu0 %v307_v39  ;;  %321 = vmatprep.subr.bf16.mxu1 %v307_v39 }
  0x53   :  { %310 = vmatpush1.bf16.msra.mxu0 %v309_v44  ;;  %329 = vmatpush1.bf16.msra.mxu1 %v309_v44 }
  0x54   :  { %312 = vmatprep.subr.bf16.mxu0 %v311_v45  ;;  %322 = vmatprep.subr.bf16.mxu1 %v311_v45 }
  0x57   :  { %314 = vmatpush1.bf16.msra.mxu0 %v313_v48  ;;  %330 = vmatpush1.bf16.msra.mxu1 %v313_v48 }
  0x5a   :  { %275 = vmatmul.mubr.msk.f32.vlgmr.msra.gmra.mrb[0].mxu0 %vm72_vm0, %v80_v53  ;;  %279 = vmatmul.mubr.msk.f32.vlgmr.msra.gmra.mrb[0].mxu1 %vm76_vm1, %v84_v54 }
  0x5b   :  { %198 = vmatprep.mubr.f32.mxu0 %v441_v0  ;;  %222 = vmatprep.mubr.f32.mxu1 %v441_v0 }
  0x5e   :  { %276 = vmatmul.mubr.msk.f32.gmra.mrb[2].mxu0 %vm73_vm2, %v81_v59  ;;  %280 = vmatmul.mubr.msk.f32.gmra.mrb[2].mxu1 %vm77_vm3, %v85_v60 }
  0x5f   :  { %204 = vmatprep.mubr.f32.mxu0 %v441_v0  ;;  %228 = vmatprep.mubr.f32.mxu1 %v441_v0 }
  0x62   :  { %277 = vmatmul.mubr.msk.f32.gmra.mrb[4].mxu0 %vm74_vm4, %v82_v2  ;;  %281 = vmatmul.mubr.msk.f32.gmra.mrb[4].mxu1 %vm78_vm5, %v86_v3 }
  0x63   :  { %210 = vmatprep.mubr.f32.mxu0 %v441_v0  ;;  %234 = vmatprep.mubr.f32.mxu1 %v441_v0 }
  0x66   :  { %278 = vmatmul.mubr.msk.f32.gmra.mrb[6].mxu0 %vm75_vm6, %v83_v8  ;;  %282 = vmatmul.mubr.msk.f32.gmra.mrb[6].mxu1 %vm79_vm7, %v87_v9 }
 0x12d   :  { %v194_v10 = vpop.f32.mrb[0].mxu0  ;;  %v218_v11 = vpop.f32.mrb[0].mxu1 }
 0x12e   :  { %241 = vst [vmem:[#allocation8] sm:$0xff] %v194_v10  ;;  %249 = vst [vmem:[#allocation8 + $0x40] sm:$0xff] %v218_v11  ;;  %v196_v12 = vpop.f32.mrb[1].mxu0  ;;  %v220_v13 = vpop.f32.mrb[1].mxu1 }
 0x12f   :  { %242 = vst [vmem:[#allocation8 + $0x8] sm:$0xff] %v196_v12  ;;  %250 = vst [vmem:[#allocation8 + $0x48] sm:$0xff] %v220_v13 }
 0x131   :  { %v200_v14 = vpop.f32.mrb[2].mxu0  ;;  %v224_v15 = vpop.f32.mrb[2].mxu1 }
 0x132   :  { %243 = vst [vmem:[#allocation8 + $0x10] sm:$0xff] %v200_v14  ;;  %251 = vst [vmem:[#allocation8 + $0x50] sm:$0xff] %v224_v15  ;;  %v202_v16 = vpop.f32.mrb[3].mxu0  ;;  %v226_v17 = vpop.f32.mrb[3].mxu1 }
 0x133   :  { %244 = vst [vmem:[#allocation8 + $0x18] sm:$0xff] %v202_v16  ;;  %252 = vst [vmem:[#allocation8 + $0x58] sm:$0xff] %v226_v17 }
 0x135   :  { %v206_v0 = vpop.f32.mrb[4].mxu0  ;;  %v230_v18 = vpop.f32.mrb[4].mxu1 }
 0x136   :  { %245 = vst [vmem:[#allocation8 + $0x20] sm:$0xff] %v206_v0  ;;  %253 = vst [vmem:[#allocation8 + $0x60] sm:$0xff] %v230_v18  ;;  %v208_v19 = vpop.f32.mrb[5].mxu0  ;;  %v232_v20 = vpop.f32.mrb[5].mxu1 }
 0x137   :  { %246 = vst [vmem:[#allocation8 + $0x28] sm:$0xff] %v208_v19  ;;  %254 = vst [vmem:[#allocation8 + $0x68] sm:$0xff] %v232_v20 }
 0x139   :  { %v212_v21 = vpop.f32.mrb[6].mxu0  ;;  %v236_v22 = vpop.f32.mrb[6].mxu1 }
 0x13a   :  { %247 = vst [vmem:[#allocation8 + $0x30] sm:$0xff] %v212_v21  ;;  %255 = vst [vmem:[#allocation8 + $0x70] sm:$0xff] %v236_v22  ;;  %v214_v23 = vpop.f32.mrb[7].mxu0  ;;  %v238_v24 = vpop.f32.mrb[7].mxu1 }
 0x13b   :  { %248 = vst [vmem:[#allocation8 + $0x38] sm:$0xff] %v214_v23  ;;  %256 = vst [vmem:[#allocation8 + $0x78] sm:$0xff] %v238_v24 }
 0x13c   :  { %417 = shalt.err (!%p414_p0)
}
 0x13d   :  { %s418_s27 = scalar_lea.hbm %s535_s3, 2048 }
 0x13e   :  { %p419_p1 = scmp.ne.s32.totalorder %s535_s3, %s418_s27  ;;  %p422_p2 = scmp.lt.u32.totalorder %s418_s27, %s535_s3 }
 0x140   :  { %p424_p3 = pnand %p422_p2, %p419_p1 }
 0x142   :  { %427 = shalt.err (!%p424_p3)
}
 0x143   :  { %268 = dma.vmem_to_hbm [thread:$0]  %s263_s23, 2048, %s535_s3, [#allocation4], %s439_s0, %s439_s0, %s440_s15  }
 0x144   :  { %432 = dma.done.wait [#allocation4], 2048  }
 0x145   :  { %433 = vsyncadd [#allocation4], 4294965248 }
 0x146   :  { %272 = vsyncpa [#allocation3], 1 }
 0x147   :  { %273 = vsyncpa [#allocation6], 1 }
 0x148   :  { %274 = vsyncpa [#allocation4], 1 }

</bundles_post_ra>
